<compile_context>
chip_gen: v7x
topology: tpu7x:2x2x1
jax: 0.10.0
libtpu: 0.0.40
codegen_flags: <defaults>
</compile_context>

<pallas_src>
import math

import numpy as np

import jax
import jax.numpy as jnp
from jax.experimental import pallas as pl
from jax.experimental.pallas import tpu as pltpu


def _round_up(x: int, m: int) -> int:
    return ((x + m - 1) // m) * m


def _resize_matmul_kernel(x_ref, m_ref, o_ref):
    # x_ref: (TM, W_in) row tile (resident across the column-grid axis)
    # m_ref: (W_in, TN) interpolation-weight column tile
    # o_ref: (TM, TN) lane-dense output tile
    o_ref[...] = jnp.dot(
        x_ref[...],
        m_ref[...],
        preferred_element_type=jnp.float32,
        precision=jax.lax.Precision.HIGHEST,
    ).astype(o_ref.dtype)


def _bilinear_resize_matrix(w_in: int, w_out: int, w_out_pad: int) -> np.ndarray:
    """Interpolation matrix M (w_in, w_out_pad) s.t. out = x @ M resizes width.

    Columns [w_out, w_out_pad) are zero padding (lane-dense output trick).
    Built on the host in f64 so the weight fractions are exact, then cast.
    """
    dst = np.arange(w_out, dtype=np.float64)
    # half-pixel-center mapping (PIL / torchvision antialias=False convention)
    src = (dst + 0.5) * (float(w_in) / float(w_out)) - 0.5
    src = np.clip(src, 0.0, float(w_in - 1))
    lo = np.floor(src).astype(np.int64)
    hi = np.minimum(lo + 1, w_in - 1)
    frac = (src - lo).astype(np.float32)

    cols = np.arange(w_out)
    m = np.zeros((w_in, w_out_pad), dtype=np.float32)
    np.add.at(m, (lo, cols), 1.0 - frac)
    np.add.at(m, (hi, cols), frac)
    return m


def _pick_tiles(rows: int, w: int, w_out_pad: int, itemsize: int):
    """Pick (tm, tn) so blocks stay comfortably inside VMEM on all chips."""
    # tn: largest multiple-of-128 divisor of w_out_pad, <= 512, with the
    # resident M column tile (w x tn) kept under ~4 MiB.
    k = w_out_pad // 128
    tn = 128
    for d in (4, 3, 2):
        if k % d == 0 and w * (128 * d) * itemsize <= (4 << 20):
            tn = 128 * d
            break

    # tm: start large (good MXU/DMA efficiency), shrink until the single-copy
    # block footprint (x tile + M tile + out tile) fits a ~6 MiB budget; the
    # pipeline double-buffers, so total stays well under the 32 MiB limit.
    tm = min(512, _round_up(rows, 16))
    while tm > 16 and (tm * w + w * tn + tm * tn) * itemsize > (6 << 20):
        tm = _round_up(tm // 2, 16)
    return tm, tn


class RandomHorizontalResize:
    """JAX/Pallas port of the PyTorch RandomHorizontalResize module (NCHW)."""

    def __init__(self, min_scale: float = 0.08, max_scale: float = 1.0,
                 interpolation=None, *, seed: int = 0):
        if min_scale > max_scale:
            raise ValueError("min_scale bigger than max_scale")
        if min_scale == 0:
            raise ValueError("min_scale can not be zero")
        self.min_scale = float(min_scale)
        self.max_scale = float(max_scale)
        self._not_equal_scales = min_scale != max_scale
        self.interpolation = interpolation  # TODO(synk): resample mode ignored.
        # Host-side RNG mirrors np.random.uniform in the reference module.
        self._rng = np.random.default_rng(seed)
        # Caches keyed by static shapes (w_out padded to multiples of 128, so
        # random scales rarely force a recompile / matrix rebuild).
        self._compiled = {}
        self._matrices = {}

    def _draw_scale(self) -> float:
        if not self._not_equal_scales:
            return self.min_scale
        return float(self._rng.uniform(self.min_scale, self.max_scale))

    def _get_matrix(self, w: int, w_out: int, w_out_pad: int, dtype):
        key = (w, w_out, w_out_pad, jnp.dtype(dtype).name)
        m = self._matrices.get(key)
        if m is None:
            m = jnp.asarray(_bilinear_resize_matrix(w, w_out, w_out_pad),
                            dtype=dtype)
            self._matrices[key] = m
        return m

    def _get_kernel(self, rows_pad: int, w: int, w_out_pad: int,
                    tm: int, tn: int, dtype):
        key = (rows_pad, w, w_out_pad, tm, tn, jnp.dtype(dtype).name)
        fn = self._compiled.get(key)
        if fn is not None:
            return fn

        itemsize = jnp.dtype(dtype).itemsize
        cost = pl.CostEstimate(
            flops=2 * rows_pad * w * w_out_pad,
            transcendentals=0,
            bytes_accessed=(rows_pad * w + w * w_out_pad
                            + rows_pad * w_out_pad) * itemsize,
        )
        fn = jax.jit(pl.pallas_call(
            _resize_matmul_kernel,
            out_shape=jax.ShapeDtypeStruct((rows_pad, w_out_pad), dtype),
            grid=(rows_pad // tm, w_out_pad // tn),
            in_specs=[
                # x row tile: constant across j -> stays resident in VMEM.
                pl.BlockSpec((tm, w), lambda i, j: (i, 0)),
                # interpolation-matrix column tile.
                pl.BlockSpec((w, tn), lambda i, j: (0, j)),
            ],
            out_specs=pl.BlockSpec((tm, tn), lambda i, j: (i, j)),
            compiler_params=pltpu.CompilerParams(
                dimension_semantics=("parallel", "parallel"),
                vmem_limit_bytes=32 * 1024 * 1024,
            ),
            cost_estimate=cost,
        ))
        self._compiled[key] = fn
        return fn

    def __call__(self, x: jnp.ndarray) -> jnp.ndarray:
        # layout: NCHW
        n, c, h, w = x.shape
        scale = self._draw_scale()
        w_out = max(1, math.ceil(w * scale))
        # Lane-dense output: pad output width up to a multiple of 128.
        w_out_pad = _round_up(w_out, 128)

        rows = n * c * h
        itemsize = jnp.dtype(x.dtype).itemsize
        tm, tn = _pick_tiles(rows, w, w_out_pad, itemsize)
        rows_pad = _round_up(rows, tm)

        x2d = x.reshape(rows, w)          # contiguous reshape, no copy
        if rows_pad > rows:
            x2d = jnp.pad(x2d, ((0, rows_pad - rows), (0, 0)))

        m = self._get_matrix(w, w_out, w_out_pad, x.dtype)
        out2d = self._get_kernel(rows_pad, w, w_out_pad, tm, tn, x.dtype)(x2d, m)
        out2d = out2d[:rows, :w_out]
        return out2d.reshape(n, c, h, w_out)


if __name__ == "__main__":
    key = jax.random.PRNGKey(0)
    x = jax.random.uniform(key, (2, 4, 16, 16), dtype=jnp.float32)  # NCHW

    module = RandomHorizontalResize(min_scale=0.08, max_scale=1.0, seed=0)
    out = jax.block_until_ready(module(x))

    # sanity: height unchanged, width = ceil(16 * scale) in [1, 16]
    assert out.shape[0] == 2 and out.shape[1] == 4 and out.shape[2] == 16
    assert 1 <= out.shape[3] <= 16
    assert bool(jnp.all(jnp.isfinite(out)))

    # identity check: scale == 1.0 must reproduce the input exactly
    ident = RandomHorizontalResize(min_scale=1.0, max_scale=1.0)
    out_id = jax.block_until_ready(ident(x))
    assert out_id.shape == x.shape
    assert bool(jnp.allclose(out_id, x, atol=1e-6))

    # downscale-by-2 check against a pure-JAX bilinear reference
    half = RandomHorizontalResize(min_scale=0.5, max_scale=0.5)
    out_half = jax.block_until_ready(half(x))
    assert out_half.shape == (2, 4, 16, 8)
    assert bool(jnp.all(jnp.isfinite(out_half)))

    print("KERNEL_OK")
</pallas_src>

<mosaic_0001>
module attributes {stable_mosaic.version = 11 : i64} {
  func.func @_resize_matmul_kernel(%arg0: i32, %arg1: i32, %arg2: memref<128x16xf32, #tpu.memory_space<vmem>>, %arg3: memref<16x128xf32, #tpu.memory_space<vmem>>, %arg4: memref<128x128xf32, #tpu.memory_space<vmem>>) attributes {dimension_semantics = [#tpu.dimension_semantics<parallel>, #tpu.dimension_semantics<parallel>], iteration_bounds = array<i64: 1, 1>, scalar_prefetch = 0 : i64, scratch_operands = 0 : i64, tpu.core_type = #tpu.core_type<tc>, window_params = [{transform_indices = @transform_0, window_bounds = array<i64: 128, 16>}, {transform_indices = @transform_1, window_bounds = array<i64: 16, 128>}, {transform_indices = @transform_2, window_bounds = array<i64: 128, 128>}]} {
    %c0 = arith.constant 0 : index
    %c0_0 = arith.constant 0 : index
    %0 = vector.load %arg2[%c0, %c0_0] : memref<128x16xf32, #tpu.memory_space<vmem>>, vector<128x16xf32>
    %c0_1 = arith.constant 0 : index
    %c0_2 = arith.constant 0 : index
    %1 = vector.load %arg3[%c0_1, %c0_2] : memref<16x128xf32, #tpu.memory_space<vmem>>, vector<16x128xf32>
    %cst = arith.constant dense<0.000000e+00> : vector<128x128xf32>
    %2 = tpu.matmul %0, %1, %cst {dimension_numbers = #tpu.dot_dimension_numbers<[1], [0], [0], [1], [0, 0, 1, 1], [], []>, precision = #tpu.contract_precision<fp32>} : vector<128x16xf32>, vector<16x128xf32>, vector<128x128xf32> -> vector<128x128xf32>
    %c0_3 = arith.constant 0 : index
    %c0_4 = arith.constant 0 : index
    %3 = vector.load %arg4[%c0_3, %c0_4] : memref<128x128xf32, #tpu.memory_space<vmem>>, vector<128x128xf32>
    tpu.vector_store %arg4[%c0_3, %c0_4], %2 {strides = array<i32>} : memref<128x128xf32, #tpu.memory_space<vmem>>, vector<128x128xf32>,
    return
  }
  func.func @transform_0(%arg0: i32, %arg1: i32) -> (i32, i32) {
    %c0_i32 = arith.constant 0 : i32
    %c0_i32_0 = arith.constant 0 : i32
    return %arg0, %c0_i32 : i32, i32
  }
  func.func @transform_1(%arg0: i32, %arg1: i32) -> (i32, i32) {
    %c0_i32 = arith.constant 0 : i32
    %c0_i32_0 = arith.constant 0 : i32
    return %c0_i32, %arg1 : i32, i32
  }
  func.func @transform_2(%arg0: i32, %arg1: i32) -> (i32, i32) {
    %c0_i32 = arith.constant 0 : i32
    return %arg0, %arg1 : i32, i32
  }
}

</mosaic_0001>

<bundles_post_ra>
// kernel: tpu_custom_call.1
= control target key start
LH: loop header
LB: loop body
LE: loop exit
PB: predicated region body
PF: predicated region fallthrough
CT: control target
= control target key end

     0   :  { %vm30_vm0 = vcmask 130048   ;;  %s1916_s0 = inlined_call_operand.vmem [shape: f32[128,16], index: 0, kind: input, shape index: {}]   ;;  %s1917_s1 = inlined_call_operand.vmem [shape: f32[16,128], index: 1, kind: input, shape index: {}]   ;;  %s1918_s2 = inlined_call_operand.hbm [shape: f32[128,128], index: 2, kind: output, shape index: {}]  }
   0x1   :  { %v28_v0 = vld [vmem:[%s1917_s1] sm:$0xff]  ;;  %v29_v1 = vld [vmem:[%s1917_s1 + $0x8] sm:$0xff]  ;;  %v14_v7 = vld [vmem:[%s1916_s0 + $0x10] sm:$0xff] }
   0x2   :  { %v12_v2 = vld [vmem:[%s1916_s0] sm:$0xff]  ;;  %v80_v3 = vand.u32 4294901760, %v28_v0  ;;  %v83_v4 = vand.u32 4294901760, %v29_v1  ;;  %v13_v6 = vld [vmem:[%s1916_s0 + $0x8] sm:$0xff]  ;;  %v15_v8 = vld [vmem:[%s1916_s0 + $0x18] sm:$0xff]  ;;  %v38_v11 = vsel %vm30_vm0, %v14_v7, 0 }
   0x3   :  { %v32_v5 = vsel %vm30_vm0, %v12_v2, 0  ;;  %v35_v10 = vsel %vm30_vm0, %v13_v6, 0  ;;  %v41_v12 = vsel %vm30_vm0, %v15_v8, 0  ;;  %v16_v13 = vld [vmem:[%s1916_s0 + $0x20] sm:$0xff]  ;;  %v1671_v16 = vand.u32 4294901760, %v38_v11  ;;  %v17_v18 = vld [vmem:[%s1916_s0 + $0x28] sm:$0xff] }
   0x4   :  { %v1659_v9 = vand.u32 4294901760, %v32_v5  ;;  %v1667_v14 = vpack.c.bf16 %v83_v4, %v80_v3  ;;  %v1669_v15 = vand.u32 4294901760, %v35_v10  ;;  %v1673_v17 = vsub.f32 %v28_v0, %v80_v3 }
   0x5   :  { %v1681_v20 = vsub.f32 %v29_v1, %v83_v4  ;;  %v1683_v21 = vand.u32 4294901760, %v41_v12  ;;  %v44_v22 = vsel %vm30_vm0, %v16_v13, 0  ;;  %v1692_v24 = vsub.f32 %v38_v11, %v1671_v16 }
   0x6   :  { %v1679_v19 = vsub.f32 %v32_v5, %v1659_v9  ;;  %1504 = vmatprep.subr.bf16.mxu0 %v1667_v14  ;;  %1492 = vmatprep.subr.bf16.mxu1 %v1667_v14  ;;  %v1689_v23 = vsub.f32 %v35_v10, %v1669_v15  ;;  %v309_v25 = vand.u32 4294901760, %v1673_v17  ;;  %v1695_v26 = vand.u32 4294901760, %v44_v22 }
   0x7   :  { %1506 = vmatpush3.bf16.msra.mxu0 %v1667_v14  ;;  %1494 = vmatpush3.bf16.msra.mxu1 %v1667_v14  ;;  %v316_v28 = vand.u32 4294901760, %v1681_v20  ;;  %v1702_v29 = vsub.f32 %v41_v12, %v1683_v21  ;;  %v47_v30 = vsel %vm30_vm0, %v17_v18, 0 }
   0x8   :  { %v148_v27 = vand.u32 4294901760, %v1679_v19 }
   0x9   :  { %7 = vsyncpa [#allocation3], 0  ;;  %v158_v31 = vand.u32 4294901760, %v1689_v23  ;;  %v168_v32 = vand.u32 4294901760, %v1692_v24  ;;  %v310_v33 = vsub.f32 %v1673_v17, %v309_v25  ;;  %v1709_v34 = vsub.f32 %v44_v22, %v1695_v26  ;;  %v18_v39 = vld [vmem:[%s1916_s0 + $0x30] sm:$0xff]  ;;  %v19_v48 = vld [vmem:[%s1916_s0 + $0x38] sm:$0xff] }
   0xa   :  { %1411 = vmatprep.mubr.f32.mxu0 %v148_v27  ;;  %v149_v35 = vsub.f32 %v1679_v19, %v148_v27  ;;  %v317_v36 = vsub.f32 %v1681_v20, %v316_v28  ;;  %v178_v37 = vand.u32 4294901760, %v1702_v29  ;;  %v1507_v38 = vpack.c.bf16 %v316_v28, %v309_v25  ;;  %v20_v49 = vld [vmem:[%s1916_s0 + $0x40] sm:$0xff]  ;;  %v21_v50 = vld [vmem:[%s1916_s0 + $0x48] sm:$0xff]  ;;  %v22_v59 = vld [vmem:[%s1916_s0 + $0x50] sm:$0xff] }
   0xb   :  { %1412 = vmatmul.mubr.f32.vlgmr.msra.gmra.mrb[0].mxu0 %v158_v31  ;;  %v159_v40 = vsub.f32 %v1689_v23, %v158_v31  ;;  %v311_v41 = vand.u32 4294901760, %v310_v33  ;;  %v169_v42 = vsub.f32 %v1692_v24, %v168_v32  ;;  %v188_v43 = vand.u32 4294901760, %v1709_v34  ;;  %v23_v60 = vld [vmem:[%s1916_s0 + $0x58] sm:$0xff]  ;;  %v24_v61 = vld [vmem:[%s1916_s0 + $0x60] sm:$0xff] }
   0xc   :  { %v150_v44 = vand.u32 4294901760, %v149_v35  ;;  %1414 = vmatprep.mubr.f32.mxu0 %v168_v32  ;;  %v318_v45 = vand.u32 4294901760, %v317_v36  ;;  %1508 = vmatprep.subr.bf16.mxu0 %v1507_v38  ;;  %v179_v46 = vsub.f32 %v1702_v29, %v178_v37  ;;  %v1721_v47 = vand.u32 4294901760, %v47_v30 }
   0xd   :  { %v160_v51 = vand.u32 4294901760, %v159_v40  ;;  %1510 = vmatpush3.bf16.msra.mxu0 %v1507_v38  ;;  %v170_v52 = vand.u32 4294901760, %v169_v42  ;;  %v189_v53 = vsub.f32 %v1709_v34, %v188_v43  ;;  %v50_v54 = vsel %vm30_vm0, %v18_v39, 0  ;;  %v26_v40 = vld [vmem:[%s1916_s0 + $0x70] sm:$0xff] }
   0xe   :  { %1327 = vmatprep.mubr.f32.mxu1 %v150_v44  ;;  %v1495_v55 = vpack.c.bf16 %v318_v45, %v311_v41  ;;  %v180_v56 = vand.u32 4294901760, %v179_v46  ;;  %v1735_v57 = vsub.f32 %v47_v30, %v1721_v47  ;;  %v1737_v58 = vand.u32 4294901760, %v50_v54  ;;  %1512 = vmatprep.subr.bf16.mxu0 %v1667_v14  ;;  %v25_v30 = vld [vmem:[%s1916_s0 + $0x68] sm:$0xff] }
   0xf   :  { %1328 = vmatmul.mubr.f32.vlgmr.msra.gmra.mrb[0].mxu1 %v160_v51  ;;  %1415 = vmatmul.mubr.f32.gmra.mrb[2].mxu0 %v178_v37  ;;  %v190_v62 = vand.u32 4294901760, %v189_v53  ;;  %v53_v63 = vsel %vm30_vm0, %v19_v48, 0  ;;  %v56_v0 = vsel %vm30_vm0, %v20_v49, 0  ;;  %v59_v1 = vsel %vm30_vm0, %v21_v50, 0  ;;  %v27_v50 = vld [vmem:[%s1916_s0 + $0x78] sm:$0xff]  ;;  %s1622_s0 = smov [#allocation2]  }
  0x10   :  { %1496 = vmatprep.subr.bf16.mxu1 %v1495_v55  ;;  %1330 = vmatprep.mubr.f32.mxu1 %v170_v52  ;;  %v198_v2 = vand.u32 4294901760, %v1735_v57  ;;  %v1754_v3 = vsub.f32 %v50_v54, %v1737_v58  ;;  %v1756_v4 = vand.u32 4294901760, %v53_v63  ;;  %v1758_v5 = vand.u32 4294901760, %v56_v0  ;;  %s1204_s16 = sshll.u32 %s1622_s0, 4  ;;  %s1205_s16 = int_to_ptr.vmem [resolvable:$true] %s1204_s16 }
  0x11   :  { %1498 = vmatpush3.bf16.msra.mxu1 %v1495_v55  ;;  %1417 = vmatprep.mubr.f32.mxu0 %v188_v43  ;;  %v1760_v6 = vand.u32 4294901760, %v59_v1  ;;  %v62_v7 = vsel %vm30_vm0, %v22_v59, 0  ;;  %v65_v8 = vsel %vm30_vm0, %v23_v60, 0  ;;  %v68_v10 = vsel %vm30_vm0, %v24_v61, 0  ;;  %s1598_s17 = scalar_lea.vmem %s1205_s16, 2048  ;;  %p1603_p1 = scmp.lt.s32.totalorder %s1205_s16, %s1205_s16 }
  0x12   :  { %v208_v11 = vand.u32 4294901760, %v1754_v3  ;;  %v199_v12 = vsub.f32 %v1735_v57, %v198_v2  ;;  %v1768_v13 = vsub.f32 %v53_v63, %v1756_v4  ;;  %v1771_v18 = vsub.f32 %v56_v0, %v1758_v5  ;;  %p1599_p0 = scmp.ne.s32.totalorder %s1205_s16, %s1598_s17  ;;  %p1604_p2 = scmp.lt.s32.totalorder %s1598_s17, %s1598_s17 }
  0x13   :  { %1331 = vmatmul.mubr.f32.gmra.mrb[2].mxu1 %v180_v56  ;;  %1418 = vmatmul.mubr.f32.gmra.mrb[4].mxu0 %v198_v2  ;;  %v1774_v22 = vsub.f32 %v59_v1, %v1760_v6  ;;  %v1776_v25 = vand.u32 4294901760, %v62_v7  ;;  %v1778_v27 = vand.u32 4294901760, %v65_v8  ;;  %v1780_v28 = vand.u32 4294901760, %v68_v10 }
  0x14   :  { %1333 = vmatprep.mubr.f32.mxu1 %v190_v62  ;;  %1420 = vmatprep.mubr.f32.mxu0 %v208_v11  ;;  %v200_v31 = vand.u32 4294901760, %v199_v12  ;;  %v218_v32 = vand.u32 4294901760, %v1768_v13  ;;  %v209_v33 = vsub.f32 %v1754_v3, %v208_v11  ;;  %v228_v35 = vand.u32 4294901760, %v1771_v18  ;;  %p1605_p3 = por %p1604_p2, %p1603_p1 }
  0x15   :  { %v238_v36 = vand.u32 4294901760, %v1774_v22  ;;  %v1790_v37 = vsub.f32 %v62_v7, %v1776_v25  ;;  %v1793_v38 = vsub.f32 %v65_v8, %v1778_v27  ;;  %v1796_v39 = vsub.f32 %v68_v10, %v1780_v28 }
  0x16   :  { %v210_v41 = vand.u32 4294901760, %v209_v33  ;;  %v219_v42 = vsub.f32 %v1768_v13, %v218_v32  ;;  %v229_v43 = vsub.f32 %v1771_v18, %v228_v35  ;;  %v71_v44 = vsel %vm30_vm0, %v25_v30, 0  ;;  %p1606_p4 = pnand %p1605_p3, %p1599_p0 }
  0x17   :  { %1334 = vmatmul.mubr.f32.gmra.mrb[4].mxu1 %v200_v31  ;;  %1421 = vmatmul.mubr.f32.gmra.mrb[6].mxu0 %v218_v32  ;;  %v248_v45 = vand.u32 4294901760, %v1790_v37  ;;  %v239_v46 = vsub.f32 %v1774_v22, %v238_v36  ;;  %v258_v48 = vand.u32 4294901760, %v1793_v38  ;;  %v268_v49 = vand.u32 4294901760, %v1796_v39 }
  0x18   :  { %1336 = vmatprep.mubr.f32.mxu1 %v210_v41  ;;  %1423 = vmatprep.mubr.f32.mxu0 %v228_v35  ;;  %v220_v51 = vand.u32 4294901760, %v219_v42  ;;  %v230_v52 = vand.u32 4294901760, %v229_v43  ;;  %v1811_v53 = vand.u32 4294901760, %v71_v44  ;;  %v74_v54 = vsel %vm30_vm0, %v26_v40, 0 }
  0x19   :  { %v249_v55 = vsub.f32 %v1790_v37, %v248_v45  ;;  %v1818_v59 = vand.u32 4294901760, %v74_v54  ;;  %v77_v60 = vsel %vm30_vm0, %v27_v50, 0  ;;  %v1499_v61 = vpack.c.bf16 %v1681_v20, %v1673_v17 }
  0x1a   :  { %v1816_v56 = vsub.f32 %v71_v44, %v1811_v53  ;;  %v240_v62 = vand.u32 4294901760, %v239_v46  ;;  %v259_v63 = vsub.f32 %v1793_v38, %v258_v48  ;;  %v1824_v0 = vand.u32 4294901760, %v77_v60 }
  0x1b   :  { %1337 = vmatmul.mubr.f32.gmra.mrb[6].mxu1 %v220_v51  ;;  %1424 = vmatmul.mubr.f32.gmra.mrb[8].mxu0 %v238_v36  ;;  %v250_v1 = vand.u32 4294901760, %v249_v55  ;;  %v269_v7 = vsub.f32 %v1796_v39, %v268_v49  ;;  %v1829_v8 = vsub.f32 %v74_v54, %v1818_v59 }
  0x1c   :  { %1339 = vmatprep.mubr.f32.mxu1 %v230_v52  ;;  %1426 = vmatprep.mubr.f32.mxu0 %v248_v45  ;;  %v278_v2 = vand.u32 4294901760, %v1816_v56  ;;  %v1832_v10 = vsub.f32 %v77_v60, %v1824_v0  ;;  %v260_v20 = vand.u32 4294901760, %v259_v63 }
  0x1d   :  { %1500 = vmatprep.subr.bf16.mxu1 %v1499_v61  ;;  %v288_v17 = vand.u32 4294901760, %v1829_v8  ;;  %v270_v30 = vand.u32 4294901760, %v269_v7 }
  0x1e   :  { %v279_v11 = vsub.f32 %v1816_v56, %v278_v2  ;;  %v298_v12 = vand.u32 4294901760, %v1832_v10 }
  0x1f   :  { %1340 = vmatmul.mubr.f32.gmra.mrb[8].mxu1 %v240_v62  ;;  %1427 = vmatmul.mubr.f32.gmra.mrb[10].mxu0 %v258_v48  ;;  %v289_v31 = vsub.f32 %v1829_v8, %v288_v17 }
  0x20   :  { %1342 = vmatprep.mubr.f32.mxu1 %v250_v1  ;;  %1429 = vmatprep.mubr.f32.mxu0 %v268_v49  ;;  %v280_v32 = vand.u32 4294901760, %v279_v11  ;;  %v299_v33 = vsub.f32 %v1832_v10, %v298_v12 }
  0x21   :  { %v290_v35 = vand.u32 4294901760, %v289_v31 }
  0x22   :  { %v300_v36 = vand.u32 4294901760, %v299_v33 }
  0x23   :  { %1343 = vmatmul.mubr.f32.gmra.mrb[10].mxu1 %v260_v20  ;;  %1430 = vmatmul.mubr.f32.gmra.mrb[12].mxu0 %v278_v2 }
  0x24   :  { %1345 = vmatprep.mubr.f32.mxu1 %v270_v30  ;;  %1432 = vmatprep.mubr.f32.mxu0 %v288_v17 }
  0x27   :  { %1346 = vmatmul.mubr.f32.gmra.mrb[12].mxu1 %v280_v32  ;;  %1433 = vmatmul.mubr.f32.gmra.mrb[14].mxu0 %v298_v12 }
  0x28   :  { %1348 = vmatprep.mubr.f32.mxu1 %v290_v35  ;;  %1439 = vmatprep.mubr.f32.mxu0 %v1659_v9 }
  0x2b   :  { %1349 = vmatmul.mubr.f32.gmra.mrb[14].mxu1 %v300_v36  ;;  %1440 = vmatmul.mubr.f32.vlgmr.msra.gmra.mrb[0].mxu0 %v1669_v15 }
  0x2c   :  { %1355 = vmatprep.mubr.f32.mxu1 %v1659_v9  ;;  %1442 = vmatprep.mubr.f32.mxu0 %v1671_v16 }
  0x2d   :  { %1514 = vmatpush3.bf16.msra.mxu0 %v1667_v14 }
  0x2f   :  { %1356 = vmatmul.mubr.f32.vlgmr.msra.gmra.mrb[0].mxu1 %v1669_v15  ;;  %1443 = vmatmul.mubr.f32.gmra.mrb[2].mxu0 %v1683_v21 }
  0x30   :  { %1502 = vmatpush3.bf16.msra.mxu1 %v1499_v61  ;;  %1358 = vmatprep.mubr.f32.mxu1 %v1671_v16 }
  0x31   :  { %1445 = vmatprep.mubr.f32.mxu0 %v1695_v26 }
  0x33   :  { %1359 = vmatmul.mubr.f32.gmra.mrb[2].mxu1 %v1683_v21  ;;  %1446 = vmatmul.mubr.f32.gmra.mrb[4].mxu0 %v1721_v47 }
  0x34   :  { %1361 = vmatprep.mubr.f32.mxu1 %v1695_v26  ;;  %1448 = vmatprep.mubr.f32.mxu0 %v1737_v58 }
  0x37   :  { %1362 = vmatmul.mubr.f32.gmra.mrb[4].mxu1 %v1721_v47  ;;  %1449 = vmatmul.mubr.f32.gmra.mrb[6].mxu0 %v1756_v4 }
  0x38   :  { %1364 = vmatprep.mubr.f32.mxu1 %v1737_v58  ;;  %1451 = vmatprep.mubr.f32.mxu0 %v1758_v5 }
  0x3b   :  { %1365 = vmatmul.mubr.f32.gmra.mrb[6].mxu1 %v1756_v4  ;;  %1452 = vmatmul.mubr.f32.gmra.mrb[8].mxu0 %v1760_v6 }
  0x3c   :  { %1367 = vmatprep.mubr.f32.mxu1 %v1758_v5  ;;  %1454 = vmatprep.mubr.f32.mxu0 %v1776_v25 }
  0x3f   :  { %1368 = vmatmul.mubr.f32.gmra.mrb[8].mxu1 %v1760_v6  ;;  %1455 = vmatmul.mubr.f32.gmra.mrb[10].mxu0 %v1778_v27 }
  0x40   :  { %1370 = vmatprep.mubr.f32.mxu1 %v1776_v25  ;;  %1457 = vmatprep.mubr.f32.mxu0 %v1780_v28 }
  0x43   :  { %1371 = vmatmul.mubr.f32.gmra.mrb[10].mxu1 %v1778_v27  ;;  %1458 = vmatmul.mubr.f32.gmra.mrb[12].mxu0 %v1811_v53 }
  0x44   :  { %1373 = vmatprep.mubr.f32.mxu1 %v1780_v28  ;;  %1460 = vmatprep.mubr.f32.mxu0 %v1818_v59 }
  0x47   :  { %1374 = vmatmul.mubr.f32.gmra.mrb[12].mxu1 %v1811_v53  ;;  %1461 = vmatmul.mubr.f32.gmra.mrb[14].mxu0 %v1824_v0 }
  0x48   :  { %1376 = vmatprep.mubr.f32.mxu1 %v1818_v59  ;;  %1467 = vmatprep.mubr.f32.mxu0 %v1659_v9 }
  0x4b   :  { %1377 = vmatmul.mubr.f32.gmra.mrb[14].mxu1 %v1824_v0  ;;  %1468 = vmatmul.mubr.f32.vlgmr.msra.gmra.mrb[0].mxu0 %v1669_v15 }
  0x4c   :  { %1383 = vmatprep.mubr.f32.mxu1 %v1679_v19  ;;  %1470 = vmatprep.mubr.f32.mxu0 %v1671_v16 }
  0x4f   :  { %1384 = vmatmul.mubr.f32.vlgmr.msra.gmra.mrb[0].mxu1 %v1689_v23  ;;  %1471 = vmatmul.mubr.f32.gmra.mrb[2].mxu0 %v1683_v21 }
  0x50   :  { %1386 = vmatprep.mubr.f32.mxu1 %v1692_v24  ;;  %1473 = vmatprep.mubr.f32.mxu0 %v1695_v26 }
  0x53   :  { %1387 = vmatmul.mubr.f32.gmra.mrb[2].mxu1 %v1702_v29  ;;  %1474 = vmatmul.mubr.f32.gmra.mrb[4].mxu0 %v1721_v47 }
  0x54   :  { %1389 = vmatprep.mubr.f32.mxu1 %v1709_v34  ;;  %1476 = vmatprep.mubr.f32.mxu0 %v1737_v58 }
  0x57   :  { %1390 = vmatmul.mubr.f32.gmra.mrb[4].mxu1 %v1735_v57  ;;  %1477 = vmatmul.mubr.f32.gmra.mrb[6].mxu0 %v1756_v4 }
  0x58   :  { %1392 = vmatprep.mubr.f32.mxu1 %v1754_v3  ;;  %1479 = vmatprep.mubr.f32.mxu0 %v1758_v5 }
  0x5b   :  { %1393 = vmatmul.mubr.f32.gmra.mrb[6].mxu1 %v1768_v13  ;;  %1480 = vmatmul.mubr.f32.gmra.mrb[8].mxu0 %v1760_v6 }
  0x5c   :  { %1395 = vmatprep.mubr.f32.mxu1 %v1771_v18  ;;  %1482 = vmatprep.mubr.f32.mxu0 %v1776_v25 }
  0x5f   :  { %1396 = vmatmul.mubr.f32.gmra.mrb[8].mxu1 %v1774_v22  ;;  %1483 = vmatmul.mubr.f32.gmra.mrb[10].mxu0 %v1778_v27 }
  0x60   :  { %1398 = vmatprep.mubr.f32.mxu1 %v1790_v37  ;;  %1485 = vmatprep.mubr.f32.mxu0 %v1780_v28 }
  0x63   :  { %1399 = vmatmul.mubr.f32.gmra.mrb[10].mxu1 %v1793_v38  ;;  %1486 = vmatmul.mubr.f32.gmra.mrb[12].mxu0 %v1811_v53 }
  0x64   :  { %1401 = vmatprep.mubr.f32.mxu1 %v1796_v39  ;;  %1488 = vmatprep.mubr.f32.mxu0 %v1818_v59 }
  0x67   :  { %1402 = vmatmul.mubr.f32.gmra.mrb[12].mxu1 %v1816_v56  ;;  %1489 = vmatmul.mubr.f32.gmra.mrb[14].mxu0 %v1824_v0 }
  0x68   :  { %1404 = vmatprep.mubr.f32.mxu1 %v1829_v8 }
  0x6b   :  { %1405 = vmatmul.mubr.f32.gmra.mrb[14].mxu1 %v1832_v10 }
 0x11e   :  { %v1469_v9 = vpop.f32.mrb[0].mxu0 }
 0x11f   :  { %v1089_v14 = vpop.f32.mrb[1].mxu0 }
 0x122   :  { %v1385_v15 = vpop.f32.mrb[0].mxu1  ;;  %v1472_v16 = vpop.f32.mrb[2].mxu0 }
 0x123   :  { %v1515_v19 = vadd.f32 %v1469_v9, %v1385_v15  ;;  %v549_v21 = vpop.f32.mrb[1].mxu1  ;;  %v1101_v23 = vpop.f32.mrb[3].mxu0 }
 0x124   :  { %v1516_v24 = vadd.f32 %v1089_v14, %v549_v21 }
 0x125   :  { %1184 = vst [vmem:[#allocation2 + $0x8] sm:$0xff] %v1515_v19 }
 0x126   :  { %1183 = vst [vmem:[#allocation2] sm:$0xff] %v1516_v24  ;;  %v1388_v26 = vpop.f32.mrb[2].mxu1  ;;  %v1475_v29 = vpop.f32.mrb[4].mxu0 }
 0x127   :  { %v1517_v34 = vadd.f32 %v1472_v16, %v1388_v26  ;;  %v563_v47 = vpop.f32.mrb[3].mxu1  ;;  %v1113_v57 = vpop.f32.mrb[5].mxu0 }
 0x128   :  { %v1518_v58 = vadd.f32 %v1101_v23, %v563_v47 }
 0x129   :  { %1186 = vst [vmem:[#allocation2 + $0x18] sm:$0xff] %v1517_v34 }
 0x12a   :  { %1185 = vst [vmem:[#allocation2 + $0x10] sm:$0xff] %v1518_v58  ;;  %v1391_v3 = vpop.f32.mrb[4].mxu1  ;;  %v1478_v4 = vpop.f32.mrb[6].mxu0 }
 0x12b   :  { %v1519_v5 = vadd.f32 %v1475_v29, %v1391_v3  ;;  %v577_v6 = vpop.f32.mrb[5].mxu1  ;;  %v1125_v13 = vpop.f32.mrb[7].mxu0 }
 0x12c   :  { %v1520_v18 = vadd.f32 %v1113_v57, %v577_v6 }
 0x12d   :  { %1188 = vst [vmem:[#allocation2 + $0x28] sm:$0xff] %v1519_v5 }
 0x12e   :  { %1187 = vst [vmem:[#allocation2 + $0x20] sm:$0xff] %v1520_v18  ;;  %v1394_v22 = vpop.f32.mrb[6].mxu1  ;;  %v1481_v25 = vpop.f32.mrb[8].mxu0 }
 0x12f   :  { %v1521_v27 = vadd.f32 %v1478_v4, %v1394_v22  ;;  %v591_v28 = vpop.f32.mrb[7].mxu1  ;;  %v1137_v37 = vpop.f32.mrb[9].mxu0 }
 0x130   :  { %v1522_v38 = vadd.f32 %v1125_v13, %v591_v28 }
 0x131   :  { %1190 = vst [vmem:[#allocation2 + $0x38] sm:$0xff] %v1521_v27 }
 0x132   :  { %1189 = vst [vmem:[#allocation2 + $0x30] sm:$0xff] %v1522_v38  ;;  %v1397_v39 = vpop.f32.mrb[8].mxu1  ;;  %v1484_v40 = vpop.f32.mrb[10].mxu0 }
 0x133   :  { %v1523_v41 = vadd.f32 %v1481_v25, %v1397_v39  ;;  %v605_v42 = vpop.f32.mrb[9].mxu1  ;;  %v1149_v43 = vpop.f32.mrb[11].mxu0 }
 0x134   :  { %v1524_v44 = vadd.f32 %v1137_v37, %v605_v42 }
 0x135   :  { %1192 = vst [vmem:[#allocation2 + $0x48] sm:$0xff] %v1523_v41 }
 0x136   :  { %1191 = vst [vmem:[#allocation2 + $0x40] sm:$0xff] %v1524_v44  ;;  %v1400_v45 = vpop.f32.mrb[10].mxu1  ;;  %v1487_v46 = vpop.f32.mrb[12].mxu0 }
 0x137   :  { %v1525_v48 = vadd.f32 %v1484_v40, %v1400_v45  ;;  %v619_v49 = vpop.f32.mrb[11].mxu1  ;;  %v1161_v50 = vpop.f32.mrb[13].mxu0 }
 0x138   :  { %v1526_v51 = vadd.f32 %v1149_v43, %v619_v49 }
 0x139   :  { %1194 = vst [vmem:[#allocation2 + $0x58] sm:$0xff] %v1525_v48 }
 0x13a   :  { %1193 = vst [vmem:[#allocation2 + $0x50] sm:$0xff] %v1526_v51  ;;  %v1403_v52 = vpop.f32.mrb[12].mxu1  ;;  %v1490_v53 = vpop.f32.mrb[14].mxu0 }
 0x13b   :  { %v1527_v54 = vadd.f32 %v1487_v46, %v1403_v52  ;;  %v633_v55 = vpop.f32.mrb[13].mxu1  ;;  %v1173_v56 = vpop.f32.mrb[15].mxu0 }
 0x13c   :  { %v1528_v59 = vadd.f32 %v1161_v50, %v633_v55 }
 0x13d   :  { %1196 = vst [vmem:[#allocation2 + $0x68] sm:$0xff] %v1527_v54 }
 0x13e   :  { %1195 = vst [vmem:[#allocation2 + $0x60] sm:$0xff] %v1528_v59  ;;  %v1406_v60 = vpop.f32.mrb[14].mxu1 }
 0x13f   :  { %v1529_v61 = vadd.f32 %v1490_v53, %v1406_v60  ;;  %v647_v62 = vpop.f32.mrb[15].mxu1 }
 0x140   :  { %v1530_v63 = vadd.f32 %v1173_v56, %v647_v62 }
 0x141   :  { %1198 = vst [vmem:[#allocation2 + $0x78] sm:$0xff] %v1529_v61 }
 0x142   :  { %1197 = vst [vmem:[#allocation2 + $0x70] sm:$0xff] %v1530_v63 }
 0x143   :  { %1609 = shalt.err (!%p1606_p4)
}
 0x144   :  { %s1610_s20 = scalar_lea.hbm %s1918_s2, 2048 }
 0x145   :  { %p1611_p5 = scmp.ne.s32.totalorder %s1918_s2, %s1610_s20  ;;  %p1614_p6 = scmp.lt.u32.totalorder %s1610_s20, %s1918_s2 }
 0x147   :  { %p1616_p7 = pnand %p1614_p6, %p1611_p5 }
 0x149   :  { %1619 = shalt.err (!%p1616_p7)
}
 0x14a   :  { %s1623_s24 = smov 128   ;;  %s1624_s25 = smov 8  }
 0x14b   :  { %1210 = dma.vmem_to_hbm [thread:$0]  %s1205_s16, 2048, %s1918_s2, [#allocation3], %s1623_s24, %s1623_s24, %s1624_s25  }
 0x14c   :  { %1620 = dma.done.wait [#allocation3], 2048  }
 0x14d   :  { %1621 = vsyncadd [#allocation3], 4294965248 }
 0x14e   :  { %1214 = vsyncpa [#allocation3], 1 }

</bundles_post_ra>
